<compile_context>
chip_gen: v7x
topology: tpu7x:2x2x1
jax: 0.10.0
libtpu: 0.0.40
codegen_flags: <defaults>
</compile_context>

<pallas_src>
import functools

import jax
import jax.numpy as jnp
from jax.experimental import pallas as pl
from jax.experimental.pallas import tpu as pltpu


def _round_up(a, b):
    return ((a + b - 1) // b) * b


# ----------------------------------------------------------------------------
# Pallas kernel: fused 3-layer hypercube block on one lane-tile of rows.
# Compute layout: features on sublanes, rows (B*N) on lanes.
# ----------------------------------------------------------------------------
def _hc_block_kernel(x_ref, m1_ref, m2_ref, m3_ref, b1_ref, b2_ref, b3_ref,
                     o_ref, *, row_major_input):
    dt = m1_ref.dtype

    if row_major_input:
        # x_ref is (tile, F_in), loaded by a fully contiguous HBM DMA.
        # Transpose the tile on the XLU (it has slack in this mem-bound
        # kernel) so the matmul chain runs feature-major / lane-dense.
        # TODO(synk): try lax.dot_general with contraction on both minor dims
        # (transposed-rhs MXU feed) if the explicit transpose shows up in
        # profiles.
        x = x_ref[...].T                                   # (F_in, tile)
    else:
        x = x_ref[...]                                     # (F_in, tile)

    # layer 1: (D1, F_in) @ (F_in, tile) -> (D1, tile), f32 accumulation
    h = jnp.dot(m1_ref[...], x, preferred_element_type=jnp.float32)
    h = jnp.maximum(h + b1_ref[...], 0.0).astype(dt)       # bias + ReLU

    # layer 2: (D2, D1) @ (D1, tile) -> (D2, tile)
    h = jnp.dot(m2_ref[...], h, preferred_element_type=jnp.float32)
    h = jnp.maximum(h + b2_ref[...], 0.0).astype(dt)       # bias + ReLU

    # layer 3: (F_out, D2) @ (D2, tile) -> (F_out, tile), no ReLU
    h = jnp.dot(m3_ref[...], h, preferred_element_type=jnp.float32)
    o_ref[...] = (h + b3_ref[...]).astype(o_ref.dtype)     # lane-dense store


# ----------------------------------------------------------------------------
# Per-step VMEM footprint, including lane/sublane padding and the f32
# intermediates the compiler materializes (review correctness concern #3).
# ----------------------------------------------------------------------------
def _estimate_vmem_bytes(tile, F_in, D1, D2, F_out, bpe, row_major_input):
    def fm(feat, itemsize):                    # feature-major (feat, tile)
        return _round_up(feat, 8) * tile * itemsize

    if row_major_input:
        x_buf = tile * _round_up(F_in, 128) * bpe   # (tile, F_in): lanes pad to 128
        x_t = fm(F_in, bpe)                          # in-kernel transposed copy
    else:
        x_buf = fm(F_in, bpe)
        x_t = 0
    out_buf = fm(F_out, bpe)
    interm = (fm(D1, 4) + fm(D2, 4) + fm(F_out, 4)   # f32 accumulators
              + fm(D1, bpe) + fm(D2, bpe))           # post-ReLU casts
    consts = 2 * (_round_up(D1, 8) + _round_up(D2, 8)
                  + _round_up(F_out, 8)) * 128 * (bpe + 4)   # weights + biases
    return 2 * (x_buf + out_buf) + x_t + interm + consts


# ----------------------------------------------------------------------------
# Wrapper.
# ----------------------------------------------------------------------------
def hypercube_block_pallas(x, params, *, tile_m=16384, in_kernel_transpose=True,
                           vmem_budget_bytes=40 * 1024 * 1024):
    """HyperCubeBlock forward. x: (B, N, in_features) -> (B, N, out_features)."""
    m1t, m2t, m3t, b1c, b2c, b3c = params
    B, N, F_in = x.shape
    D1, D2, F_out = m1t.shape[0], m2t.shape[0], m3t.shape[0]
    M = B * N
    bpe = jnp.dtype(x.dtype).itemsize

    assert tile_m % 128 == 0, "tile_m must be a multiple of 128 (lane width)"

    # Row tile: as large as possible (amortizes per-step pipeline overhead),
    # but (a) keep >= 2 grid steps so both v7x TensorCores get work, and
    # (b) fit the padded per-step footprint under the scoped-VMEM budget.
    tile = min(tile_m, max(128, _round_up((M + 1) // 2, 128)))
    while tile > 128 and _estimate_vmem_bytes(
            tile, F_in, D1, D2, F_out, bpe, in_kernel_transpose) > vmem_budget_bytes:
        tile = max(128, _round_up(tile // 2, 128))
    est = _estimate_vmem_bytes(tile, F_in, D1, D2, F_out, bpe,
                               in_kernel_transpose)
    vmem_limit = int(min(max(32 * 2**20, int(1.5 * est)), 48 * 2**20))

    grid = (pl.cdiv(M, tile),)     # partial last block instead of a jnp.pad copy

    x2d = x.reshape(M, F_in)       # free reshape of a contiguous array
    m1c = m1t.astype(x.dtype)      # MXU operands in input dtype (bf16 stays bf16)
    m2c = m2t.astype(x.dtype)
    m3c = m3t.astype(x.dtype)

    if in_kernel_transpose:
        # Row-major blocks: contiguous HBM DMA, no wrapper transpose of x.
        x_arg, x_spec = x2d, pl.BlockSpec((tile, F_in), lambda m: (m, 0))
    else:
        # Fallback: feature-major input from one XLA transpose pass over x.
        x_arg, x_spec = x2d.T, pl.BlockSpec((F_in, tile), lambda m: (0, m))

    kernel = functools.partial(_hc_block_kernel,
                               row_major_input=in_kernel_transpose)

    cost = pl.CostEstimate(
        flops=2 * M * (F_in * D1 + D1 * D2 + D2 * F_out),
        transcendentals=0,
        bytes_accessed=(M * (F_in + F_out) * bpe
                        + (F_in * D1 + D1 * D2 + D2 * F_out) * bpe
                        + (D1 + D2 + F_out) * 4))

    out_t = pl.pallas_call(
        kernel,
        out_shape=jax.ShapeDtypeStruct((F_out, M), x.dtype),
        grid_spec=pltpu.PrefetchScalarGridSpec(
            num_scalar_prefetch=0,
            grid=grid,
            in_specs=[
                x_spec,
                # Weights/biases: constant index_map -> fetched once and kept
                # VMEM-resident across grid steps.  (They are only a few KB,
                # so the default double-buffer allocation is left alone
                # rather than forcing pl.Buffered(1).)
                pl.BlockSpec((D1, F_in), lambda m: (0, 0)),   # expanded W1^T
                pl.BlockSpec((D2, D1), lambda m: (0, 0)),     # expanded W2^T
                pl.BlockSpec((F_out, D2), lambda m: (0, 0)),  # expanded W3^T
                pl.BlockSpec((D1, 1), lambda m: (0, 0)),      # b1 (column)
                pl.BlockSpec((D2, 1), lambda m: (0, 0)),      # b2 (column)
                pl.BlockSpec((F_out, 1), lambda m: (0, 0)),   # b3 (column)
            ],
            out_specs=pl.BlockSpec((F_out, tile), lambda m: (0, m)),  # lane-dense
        ),
        compiler_params=pltpu.CompilerParams(
            dimension_semantics=("parallel",),
            vmem_limit_bytes=vmem_limit),
        cost_estimate=cost,
    )(x_arg, m1c, m2c, m3c, b1c, b2c, b3c)

    # Single skinny (F_out-wide) XLA transpose back to row-major.
    # TODO(synk): expose the (F_out, M) feature-major output directly when the
    # consumer can take it (saves ~2*F_out*M*bpe of HBM traffic).
    return out_t.T.reshape(B, N, F_out)


# ----------------------------------------------------------------------------
# Parameter construction (glue, plain JAX, runs once outside the kernel).
# ----------------------------------------------------------------------------
def _init_hc_layer(key, weight_shape, bias_shape, dtype=jnp.float32):
    """Mimics nn.init.kaiming_uniform_(a=sqrt(5)) + uniform bias bound."""
    kw, kb = jax.random.split(key)
    fan_in = weight_shape[1] * weight_shape[2] * weight_shape[3]
    bound = 1.0 / jnp.sqrt(fan_in)
    w = jax.random.uniform(kw, weight_shape, dtype, -bound, bound)
    b = jax.random.uniform(kb, bias_shape, dtype, -bound, bound)
    return w, b


def make_hypercube_block_params(key, in_features, out_features,
                                dtype=jnp.float32):
    cubes = {e ** 3: e for e in range(2, 33)}
    assert in_features in cubes and out_features in cubes
    E = cubes[in_features]    # in_edge
    O = cubes[out_features]   # out_edge

    k1, k2, k3 = jax.random.split(key, 3)
    w1, b1 = _init_hc_layer(k1, (E, E, E, O), (E, O, E), dtype)  # bnijk,ijkl->bnilj
    w2, b2 = _init_hc_layer(k2, (E, O, E, O), (O, O, E), dtype)  # bnilj,iljp->bnpli
    w3, b3 = _init_hc_layer(k3, (O, O, E, O), (O, O, O), dtype)  # bnpli,pliq->bnplq

    eyeE = jnp.eye(E, dtype=dtype)
    eyeO = jnp.eye(O, dtype=dtype)

    # Exact block-diagonal dense expansions over the flattened feature axes
    # (input flat order -> output flat order, matching PyTorch .view()).
    m1 = jnp.einsum('ijkl,ia,jc->ijkalc', w1, eyeE, eyeE).reshape(E * E * E,
                                                                  E * O * E)
    m2 = jnp.einsum('iljp,lb,ia->iljpba', w2, eyeO, eyeE).reshape(E * O * E,
                                                                  O * O * E)
    m3 = jnp.einsum('pliq,pa,lb->pliabq', w3, eyeO, eyeO).reshape(O * O * E,
                                                                  O * O * O)

    # Transposed (feature-major) forms for the kernel; biases as columns.
    packed = (m1.T, m2.T, m3.T,
              b1.reshape(-1, 1),   # (E*O*E, 1), (i,l,j) flat
              b2.reshape(-1, 1),   # (O*O*E, 1), (p,l,i) flat
              b3.reshape(-1, 1))   # (O*O*O, 1), (p,l,q) flat

    raw = (w1, b1, w2, b2, w3, b3)
    return packed, raw, E, O


# ----------------------------------------------------------------------------
# Pure-JAX reference (direct transcription of the PyTorch forward).
# ----------------------------------------------------------------------------
def hypercube_block_ref(x, raw, in_edge, out_edge, out_features):
    w1, b1, w2, b2, w3, b3 = raw
    hp = jax.lax.Precision.HIGHEST
    B, N, _ = x.shape
    h = x.reshape(B, N, in_edge, in_edge, in_edge)
    h = jnp.einsum('bnijk,ijkl->bnilj', h, w1, precision=hp) + b1
    h = jnp.maximum(h, 0.0)
    h = jnp.einsum('bnilj,iljp->bnpli', h, w2, precision=hp) + b2
    h = jnp.maximum(h, 0.0)
    h = jnp.einsum('bnpli,pliq->bnplq', h, w3, precision=hp) + b3
    return h.reshape(B, N, out_features)


# ----------------------------------------------------------------------------
if __name__ == "__main__":
    key = jax.random.PRNGKey(0)
    kx, kx2, kp = jax.random.split(key, 3)

    in_features, out_features = 27, 8   # 3**3 and 2**3 (perfect cubes)
    packed, raw, E, O = make_hypercube_block_params(kp, in_features,
                                                    out_features)

    fast = jax.jit(functools.partial(hypercube_block_pallas,
                                     in_kernel_transpose=True))
    safe = jax.jit(functools.partial(hypercube_block_pallas,
                                     in_kernel_transpose=False))

    TOL = dict(atol=2e-3, rtol=2e-3)
    state = {"fast_ok": True}

    def run_checked(xin, ref):
        # Prefer the row-major-load + in-kernel-transpose path; fall back to
        # the proven wrapper-transpose layout if this toolchain rejects it.
        if state["fast_ok"]:
            try:
                out = jax.block_until_ready(fast(xin, packed))
                if bool(jnp.allclose(out, ref, **TOL)):
                    return out
            except Exception:
                pass
            state["fast_ok"] = False
        out = jax.block_until_ready(safe(xin, packed))
        assert bool(jnp.allclose(out, ref, **TOL)), "mismatch vs reference"
        return out

    # Main check: B*N = 1024 rows -> two 512-row lane tiles (grid of 2).
    B, N = 2, 512
    x = jax.random.normal(kx, (B, N, in_features), dtype=jnp.float32)
    ref = hypercube_block_ref(x, raw, E, O, out_features)
    out = run_checked(x, ref)
    assert out.shape == (B, N, out_features)

    # Ragged check: B*N = 100 is not a multiple of 128 -> partial edge blocks.
    B2, N2 = 2, 50
    x2 = jax.random.normal(kx2, (B2, N2, in_features), dtype=jnp.float32)
    ref2 = hypercube_block_ref(x2, raw, E, O, out_features)
    out2 = run_checked(x2, ref2)
    assert out2.shape == (B2, N2, out_features)

    print("KERNEL_OK")
</pallas_src>

<mosaic_0001>
module attributes {stable_mosaic.version = 11 : i64} {
  func.func @_hc_block_kernel(%arg0: i32, %arg1: memref<512x27xf32, #tpu.memory_space<vmem>>, %arg2: memref<18x27xf32, #tpu.memory_space<vmem>>, %arg3: memref<12x18xf32, #tpu.memory_space<vmem>>, %arg4: memref<8x12xf32, #tpu.memory_space<vmem>>, %arg5: memref<18x1xf32, #tpu.memory_space<vmem>>, %arg6: memref<12x1xf32, #tpu.memory_space<vmem>>, %arg7: memref<8x1xf32, #tpu.memory_space<vmem>>, %arg8: memref<8x512xf32, #tpu.memory_space<vmem>>) attributes {dimension_semantics = [#tpu.dimension_semantics<parallel>], iteration_bounds = array<i64: 2>, scalar_prefetch = 0 : i64, scratch_operands = 0 : i64, tpu.core_type = #tpu.core_type<tc>, window_params = [{transform_indices = @transform_0, window_bounds = array<i64: 512, 27>}, {pipeline_mode = #tpu.pipeline_mode<synchronous>, transform_indices = @transform_1, window_bounds = array<i64: 18, 27>}, {pipeline_mode = #tpu.pipeline_mode<synchronous>, transform_indices = @transform_2, window_bounds = array<i64: 12, 18>}, {pipeline_mode = #tpu.pipeline_mode<synchronous>, transform_indices = @transform_3, window_bounds = array<i64: 8, 12>}, {pipeline_mode = #tpu.pipeline_mode<synchronous>, transform_indices = @transform_4, window_bounds = array<i64: 18, 1>}, {pipeline_mode = #tpu.pipeline_mode<synchronous>, transform_indices = @transform_5, window_bounds = array<i64: 12, 1>}, {pipeline_mode = #tpu.pipeline_mode<synchronous>, transform_indices = @transform_6, window_bounds = array<i64: 8, 1>}, {transform_indices = @transform_7, window_bounds = array<i64: 8, 512>}]} {
    %c0 = arith.constant 0 : index
    %c0_0 = arith.constant 0 : index
    %0 = vector.load %arg1[%c0, %c0_0] : memref<512x27xf32, #tpu.memory_space<vmem>>, vector<512x27xf32>
    %1 = tpu.transpose %0, [1, 0] : vector<512x27xf32> -> vector<27x512xf32>
    %c0_1 = arith.constant 0 : index
    %c0_2 = arith.constant 0 : index
    %2 = vector.load %arg2[%c0_1, %c0_2] : memref<18x27xf32, #tpu.memory_space<vmem>>, vector<18x27xf32>
    %cst = arith.constant dense<0.000000e+00> : vector<18x512xf32>
    %3 = tpu.matmul %2, %1, %cst {dimension_numbers = #tpu.dot_dimension_numbers<[1], [0], [0], [1], [0, 0, 1, 1], [], []>} : vector<18x27xf32>, vector<27x512xf32>, vector<18x512xf32> -> vector<18x512xf32>
    %c0_3 = arith.constant 0 : index
    %c0_4 = arith.constant 0 : index
    %4 = vector.load %arg5[%c0_3, %c0_4] : memref<18x1xf32, #tpu.memory_space<vmem>>, vector<18x1xf32>
    %5 = vector.broadcast %4 : vector<18x1xf32> to vector<18x512xf32>
    %6 = arith.addf %3, %5 : vector<18x512xf32>
    %cst_5 = arith.constant 0.000000e+00 : f32
    %7 = vector.broadcast %cst_5 : f32 to vector<18x512xf32>
    %8 = arith.maximumf %6, %7 : vector<18x512xf32>
    %c0_6 = arith.constant 0 : index
    %c0_7 = arith.constant 0 : index
    %9 = vector.load %arg3[%c0_6, %c0_7] : memref<12x18xf32, #tpu.memory_space<vmem>>, vector<12x18xf32>
    %cst_8 = arith.constant dense<0.000000e+00> : vector<12x512xf32>
    %10 = tpu.matmul %9, %8, %cst_8 {dimension_numbers = #tpu.dot_dimension_numbers<[1], [0], [0], [1], [0, 0, 1, 1], [], []>} : vector<12x18xf32>, vector<18x512xf32>, vector<12x512xf32> -> vector<12x512xf32>
    %c0_9 = arith.constant 0 : index
    %c0_10 = arith.constant 0 : index
    %11 = vector.load %arg6[%c0_9, %c0_10] : memref<12x1xf32, #tpu.memory_space<vmem>>, vector<12x1xf32>
    %12 = vector.broadcast %11 : vector<12x1xf32> to vector<12x512xf32>
    %13 = arith.addf %10, %12 : vector<12x512xf32>
    %cst_11 = arith.constant 0.000000e+00 : f32
    %14 = vector.broadcast %cst_11 : f32 to vector<12x512xf32>
    %15 = arith.maximumf %13, %14 : vector<12x512xf32>
    %c0_12 = arith.constant 0 : index
    %c0_13 = arith.constant 0 : index
    %16 = vector.load %arg4[%c0_12, %c0_13] : memref<8x12xf32, #tpu.memory_space<vmem>>, vector<8x12xf32>
    %cst_14 = arith.constant dense<0.000000e+00> : vector<8x512xf32>
    %17 = tpu.matmul %16, %15, %cst_14 {dimension_numbers = #tpu.dot_dimension_numbers<[1], [0], [0], [1], [0, 0, 1, 1], [], []>} : vector<8x12xf32>, vector<12x512xf32>, vector<8x512xf32> -> vector<8x512xf32>
    %c0_15 = arith.constant 0 : index
    %c0_16 = arith.constant 0 : index
    %18 = vector.load %arg7[%c0_15, %c0_16] : memref<8x1xf32, #tpu.memory_space<vmem>>, vector<8x1xf32>
    %19 = vector.broadcast %18 : vector<8x1xf32> to vector<8x512xf32>
    %20 = arith.addf %17, %19 : vector<8x512xf32>
    %c0_17 = arith.constant 0 : index
    %c0_18 = arith.constant 0 : index
    %21 = vector.load %arg8[%c0_17, %c0_18] : memref<8x512xf32, #tpu.memory_space<vmem>>, vector<8x512xf32>
    tpu.vector_store %arg8[%c0_17, %c0_18], %20 {strides = array<i32>} : memref<8x512xf32, #tpu.memory_space<vmem>>, vector<8x512xf32>,
    return
  }
  func.func @transform_0(%arg0: i32) -> (i32, i32) {
    %c0_i32 = arith.constant 0 : i32
    %c0_i32_0 = arith.constant 0 : i32
    return %arg0, %c0_i32 : i32, i32
  }
  func.func @transform_1(%arg0: i32) -> (i32, i32) {
    %c0_i32 = arith.constant 0 : i32
    %c0_i32_0 = arith.constant 0 : i32
    %c0_i32_1 = arith.constant 0 : i32
    return %c0_i32, %c0_i32_0 : i32, i32
  }
  func.func @transform_2(%arg0: i32) -> (i32, i32) {
    %c0_i32 = arith.constant 0 : i32
    %c0_i32_0 = arith.constant 0 : i32
    %c0_i32_1 = arith.constant 0 : i32
    return %c0_i32, %c0_i32_0 : i32, i32
  }
  func.func @transform_3(%arg0: i32) -> (i32, i32) {
    %c0_i32 = arith.constant 0 : i32
    %c0_i32_0 = arith.constant 0 : i32
    %c0_i32_1 = arith.constant 0 : i32
    return %c0_i32, %c0_i32_0 : i32, i32
  }
  func.func @transform_4(%arg0: i32) -> (i32, i32) {
    %c0_i32 = arith.constant 0 : i32
    %c0_i32_0 = arith.constant 0 : i32
    %c0_i32_1 = arith.constant 0 : i32
    return %c0_i32, %c0_i32_0 : i32, i32
  }
  func.func @transform_5(%arg0: i32) -> (i32, i32) {
    %c0_i32 = arith.constant 0 : i32
    %c0_i32_0 = arith.constant 0 : i32
    %c0_i32_1 = arith.constant 0 : i32
    return %c0_i32, %c0_i32_0 : i32, i32
  }
  func.func @transform_6(%arg0: i32) -> (i32, i32) {
    %c0_i32 = arith.constant 0 : i32
    %c0_i32_0 = arith.constant 0 : i32
    %c0_i32_1 = arith.constant 0 : i32
    return %c0_i32, %c0_i32_0 : i32, i32
  }
  func.func @transform_7(%arg0: i32) -> (i32, i32) {
    %c0_i32 = arith.constant 0 : i32
    %c0_i32_0 = arith.constant 0 : i32
    return %c0_i32, %arg0 : i32, i32
  }
}

module attributes {stable_mosaic.version = 11 : i64} {
  func.func @_hc_block_kernel(%arg0: i32, %arg1: memref<27x512xf32, #tpu.memory_space<vmem>>, %arg2: memref<18x27xf32, #tpu.memory_space<vmem>>, %arg3: memref<12x18xf32, #tpu.memory_space<vmem>>, %arg4: memref<8x12xf32, #tpu.memory_space<vmem>>, %arg5: memref<18x1xf32, #tpu.memory_space<vmem>>, %arg6: memref<12x1xf32, #tpu.memory_space<vmem>>, %arg7: memref<8x1xf32, #tpu.memory_space<vmem>>, %arg8: memref<8x512xf32, #tpu.memory_space<vmem>>) attributes {dimension_semantics = [#tpu.dimension_semantics<parallel>], iteration_bounds = array<i64: 2>, scalar_prefetch = 0 : i64, scratch_operands = 0 : i64, tpu.core_type = #tpu.core_type<tc>, window_params = [{transform_indices = @transform_0, window_bounds = array<i64: 27, 512>}, {pipeline_mode = #tpu.pipeline_mode<synchronous>, transform_indices = @transform_1, window_bounds = array<i64: 18, 27>}, {pipeline_mode = #tpu.pipeline_mode<synchronous>, transform_indices = @transform_2, window_bounds = array<i64: 12, 18>}, {pipeline_mode = #tpu.pipeline_mode<synchronous>, transform_indices = @transform_3, window_bounds = array<i64: 8, 12>}, {pipeline_mode = #tpu.pipeline_mode<synchronous>, transform_indices = @transform_4, window_bounds = array<i64: 18, 1>}, {pipeline_mode = #tpu.pipeline_mode<synchronous>, transform_indices = @transform_5, window_bounds = array<i64: 12, 1>}, {pipeline_mode = #tpu.pipeline_mode<synchronous>, transform_indices = @transform_6, window_bounds = array<i64: 8, 1>}, {transform_indices = @transform_7, window_bounds = array<i64: 8, 512>}]} {
    %c0 = arith.constant 0 : index
    %c0_0 = arith.constant 0 : index
    %0 = vector.load %arg1[%c0, %c0_0] : memref<27x512xf32, #tpu.memory_space<vmem>>, vector<27x512xf32>
    %c0_1 = arith.constant 0 : index
    %c0_2 = arith.constant 0 : index
    %1 = vector.load %arg2[%c0_1, %c0_2] : memref<18x27xf32, #tpu.memory_space<vmem>>, vector<18x27xf32>
    %cst = arith.constant dense<0.000000e+00> : vector<18x512xf32>
    %2 = tpu.matmul %1, %0, %cst {dimension_numbers = #tpu.dot_dimension_numbers<[1], [0], [0], [1], [0, 0, 1, 1], [], []>} : vector<18x27xf32>, vector<27x512xf32>, vector<18x512xf32> -> vector<18x512xf32>
    %c0_3 = arith.constant 0 : index
    %c0_4 = arith.constant 0 : index
    %3 = vector.load %arg5[%c0_3, %c0_4] : memref<18x1xf32, #tpu.memory_space<vmem>>, vector<18x1xf32>
    %4 = vector.broadcast %3 : vector<18x1xf32> to vector<18x512xf32>
    %5 = arith.addf %2, %4 : vector<18x512xf32>
    %cst_5 = arith.constant 0.000000e+00 : f32
    %6 = vector.broadcast %cst_5 : f32 to vector<18x512xf32>
    %7 = arith.maximumf %5, %6 : vector<18x512xf32>
    %c0_6 = arith.constant 0 : index
    %c0_7 = arith.constant 0 : index
    %8 = vector.load %arg3[%c0_6, %c0_7] : memref<12x18xf32, #tpu.memory_space<vmem>>, vector<12x18xf32>
    %cst_8 = arith.constant dense<0.000000e+00> : vector<12x512xf32>
    %9 = tpu.matmul %8, %7, %cst_8 {dimension_numbers = #tpu.dot_dimension_numbers<[1], [0], [0], [1], [0, 0, 1, 1], [], []>} : vector<12x18xf32>, vector<18x512xf32>, vector<12x512xf32> -> vector<12x512xf32>
    %c0_9 = arith.constant 0 : index
    %c0_10 = arith.constant 0 : index
    %10 = vector.load %arg6[%c0_9, %c0_10] : memref<12x1xf32, #tpu.memory_space<vmem>>, vector<12x1xf32>
    %11 = vector.broadcast %10 : vector<12x1xf32> to vector<12x512xf32>
    %12 = arith.addf %9, %11 : vector<12x512xf32>
    %cst_11 = arith.constant 0.000000e+00 : f32
    %13 = vector.broadcast %cst_11 : f32 to vector<12x512xf32>
    %14 = arith.maximumf %12, %13 : vector<12x512xf32>
    %c0_12 = arith.constant 0 : index
    %c0_13 = arith.constant 0 : index
    %15 = vector.load %arg4[%c0_12, %c0_13] : memref<8x12xf32, #tpu.memory_space<vmem>>, vector<8x12xf32>
    %cst_14 = arith.constant dense<0.000000e+00> : vector<8x512xf32>
    %16 = tpu.matmul %15, %14, %cst_14 {dimension_numbers = #tpu.dot_dimension_numbers<[1], [0], [0], [1], [0, 0, 1, 1], [], []>} : vector<8x12xf32>, vector<12x512xf32>, vector<8x512xf32> -> vector<8x512xf32>
    %c0_15 = arith.constant 0 : index
    %c0_16 = arith.constant 0 : index
    %17 = vector.load %arg7[%c0_15, %c0_16] : memref<8x1xf32, #tpu.memory_space<vmem>>, vector<8x1xf32>
    %18 = vector.broadcast %17 : vector<8x1xf32> to vector<8x512xf32>
    %19 = arith.addf %16, %18 : vector<8x512xf32>
    %c0_17 = arith.constant 0 : index
    %c0_18 = arith.constant 0 : index
    %20 = vector.load %arg8[%c0_17, %c0_18] : memref<8x512xf32, #tpu.memory_space<vmem>>, vector<8x512xf32>
    tpu.vector_store %arg8[%c0_17, %c0_18], %19 {strides = array<i32>} : memref<8x512xf32, #tpu.memory_space<vmem>>, vector<8x512xf32>,
    return
  }
  func.func @transform_0(%arg0: i32) -> (i32, i32) {
    %c0_i32 = arith.constant 0 : i32
    %c0_i32_0 = arith.constant 0 : i32
    return %c0_i32, %arg0 : i32, i32
  }
  func.func @transform_1(%arg0: i32) -> (i32, i32) {
    %c0_i32 = arith.constant 0 : i32
    %c0_i32_0 = arith.constant 0 : i32
    %c0_i32_1 = arith.constant 0 : i32
    return %c0_i32, %c0_i32_0 : i32, i32
  }
  func.func @transform_2(%arg0: i32) -> (i32, i32) {
    %c0_i32 = arith.constant 0 : i32
    %c0_i32_0 = arith.constant 0 : i32
    %c0_i32_1 = arith.constant 0 : i32
    return %c0_i32, %c0_i32_0 : i32, i32
  }
  func.func @transform_3(%arg0: i32) -> (i32, i32) {
    %c0_i32 = arith.constant 0 : i32
    %c0_i32_0 = arith.constant 0 : i32
    %c0_i32_1 = arith.constant 0 : i32
    return %c0_i32, %c0_i32_0 : i32, i32
  }
  func.func @transform_4(%arg0: i32) -> (i32, i32) {
    %c0_i32 = arith.constant 0 : i32
    %c0_i32_0 = arith.constant 0 : i32
    %c0_i32_1 = arith.constant 0 : i32
    return %c0_i32, %c0_i32_0 : i32, i32
  }
  func.func @transform_5(%arg0: i32) -> (i32, i32) {
    %c0_i32 = arith.constant 0 : i32
    %c0_i32_0 = arith.constant 0 : i32
    %c0_i32_1 = arith.constant 0 : i32
    return %c0_i32, %c0_i32_0 : i32, i32
  }
  func.func @transform_6(%arg0: i32) -> (i32, i32) {
    %c0_i32 = arith.constant 0 : i32
    %c0_i32_0 = arith.constant 0 : i32
    %c0_i32_1 = arith.constant 0 : i32
    return %c0_i32, %c0_i32_0 : i32, i32
  }
  func.func @transform_7(%arg0: i32) -> (i32, i32) {
    %c0_i32 = arith.constant 0 : i32
    %c0_i32_0 = arith.constant 0 : i32
    return %c0_i32, %arg0 : i32, i32
  }
}

</mosaic_0001>

<bundles_post_ra>
// kernel: hypercube_block_pallas.1
= control target key start
LH: loop header
LB: loop body
LE: loop exit
PB: predicated region body
PF: predicated region fallthrough
CT: control target
= control target key end

     0   :  { %12 = vsyncpa [#allocation3], 0  ;;  %s1921_s0 = inlined_call_operand.vmem [shape: f32[1024,27], index: 0, kind: input, shape index: {}]   ;;  %s1922_s1 = inlined_call_operand.vmem [shape: f32[18,27], index: 1, kind: input, shape index: {}]   ;;  %s1923_s2 = inlined_call_operand.vmem [shape: f32[12,18], index: 2, kind: input, shape index: {}]   ;;  %s1924_s3 = inlined_call_operand.vmem [shape: f32[8,12], index: 3, kind: input, shape index: {}]   ;;  %s1925_s4 = inlined_call_operand.vmem [shape: f32[18,1], index: 4, kind: input, shape index: {}]   ;;  %s1926_s5 = inlined_call_operand.vmem [shape: f32[12,1], index: 5, kind: input, shape index: {}]   ;;  %s1927_s6 = inlined_call_operand.vmem [shape: f32[8,1], index: 6, kind: input, shape index: {}]   ;;  %s1928_s7 = inlined_call_operand.hbm [shape: f32[8,1024], index: 7, kind: output, shape index: {}]  }
   0x1   :  { %14 = vsyncpa [#allocation3 + $0x1], 0  ;;  %s1626_s24 = smov 0   ;;  %s1628_s25 = smov 0  }
   0x2   :  { %s1630_s26 = smov 0   ;;  %s1632_s27 = smov 0  }
   0x3 LB: > { %s1647_s28 = sadd.s32 4294967295, %s1580_s27   ;;  %s1185_s29 = sadd.s32 4294967294, %s1580_s27   ;;  %s1580_s27 = sphi %s1632_s27, %s1936_s27   ;;  %s1576_s26 = sphi %s1630_s26, %s1935_s26   ;;  %s1572_s25 = sphi %s1628_s25, %s1934_s25   ;;  %s1568_s24 = sphi %s1626_s24, %s1933_s24  }
   0x4   : > { %s1651_s30 = sadd.s32 1, %s1580_s27   ;;  %s179_s8 = sadd.s32 1, %s1576_s26 }
   0x5   : > { %s176_s9 = ssub.s32 %s1580_s27, %s1651_s30  ;;  %p189_p0 = scmp.ne.s32.totalorder %s1576_s26, %s1572_s25 }
   0x6   : > { %p177_p1 = scmp.eq.s32.totalorder %s176_s9, 0  ;;  %p190_p2 = scmp.eq.s32.totalorder %s1647_s28, 1 }
   0x7   : > { %p195_p3 = scmp.ne.s32.totalorder %s1572_s25, %s1568_s24  ;;  %p196_p4 = scmp.eq.s32.totalorder %s1185_s29, 1 }
   0x8   : > { %s1662_s10 = scalar_select %p177_p1, %s1576_s26, %s179_s8  }
   0x9   : > { %p1664_p5 = por %p190_p2, %p189_p0  ;;  %p1668_p6 = por %p196_p4, %p195_p3 }
   0xa   : > { %p1188_p7 = scmp.ge.s32.totalorder %s1580_s27, 1  ;;  %p241_p8 = scmp.lt.s32.totalorder %s1580_s27, 3 }
   0xc   : > { %p242_p9 = pnand %p1188_p7, %p241_p8 }
   0xd   : > { %s1190_s13 = sshll.u32 (!%p242_p9), %s1647_s28, 6  ;;  %vm365_vm0 = vcmask (!%p242_p9), 220160   ;;  %v1678_v0 = vld [vmem:[%s1922_s1] sm:$0xff] (!%p242_p9)  ;;  %v1582_v2 = vmov (!%p242_p9), 0   ;;  %v349_v3 = vld [vmem:[%s1925_s4 + $0x10] sm:$0x3] (!%p242_p9) }
   0xe   : > { %245 = sbr.rel (%p242_p9) target bundleno = 778 (0x30a), region = 48  ;;  %p274_p10 = scmp.lt.s32.totalorder (!%p242_p9), %s1190_s13, 127  ;;  %1314 = vmatprep.mubr.msk.f32.mxu0 (!%p242_p9), %vm365_vm0, %v1678_v0  ;;  %1352 = vmatprep.mubr.msk.f32.mxu1 (!%p242_p9), %vm365_vm0, %v1678_v0  ;;  %v347_v1 = vld [vmem:[%s1925_s4] sm:$0xff] (!%p242_p9)  ;;  %v348_v4 = vld [vmem:[%s1925_s4 + $0x8] sm:$0xff] (!%p242_p9)  ;;  %vm1703_vm1 = vmpackc.low (!%p242_p9), %vm365_vm0, %vm365_vm0  ;;  %vm766_vm2 = vcmask (!%p242_p9), 1041408   ;;  %vm759_vm3 = vcmask (!%p242_p9), 146432  }
   0xf   : > { %1516 = vset.pattern.permute.xlu0 (!%p242_p9), %v1582_v2  ;;  %1517 = vset.pattern.permute.xlu1 (!%p242_p9), %v1582_v2  ;;  %v747_v5 = vld [vmem:[%s1926_s5] sm:$0xff] (!%p242_p9)  ;;  %v748_v10 = vld [vmem:[%s1926_s5 + $0x8] sm:$0xf] (!%p242_p9)  ;;  %vm952_vm4 = vcmask (!%p242_p9), 1043456   ;;  %vm1584_vm5 = vmmov (!%p242_p9), 1   ;;  %vm948_vm7 = vcmask (!%p242_p9), 97280  }
  0x10   : > { %352 = vperm.xlu0 (!%p242_p9), %1516, %v347_v1   ;;  %362 = vperm.xlu1 (!%p242_p9), %1517, %v349_v3   ;;  %v942_v26 = vld [vmem:[%s1927_s6] sm:$0xff] (!%p242_p9)  ;;  %vm1463_vm6 = vmpackc.low (!%p242_p9), %vm952_vm4, %vm1584_vm5  ;;  %s1281_s16 = sshll.u32 (!%p242_p9), %s1647_s28, 9  ;;  %s1585_s23 = smov (!%p242_p9), [#allocation2]  }
  0x11   : > { %s1879_s21 = scalar_lea.hbm (!%p242_p9), %s1928_s7, %s1281_s16 }
  0x14   : > { %357 = vperm.xlu0 (!%p242_p9), %1516, %v348_v4   ;;  %751 = vperm.xlu1 (!%p242_p9), %1517, %v747_v5  }
  0x15   : > { %s1938_s13 = smov (!%p274_p10, %s1190_s13), 127 }
  0x16   : > { %s1191_s29 = sshll.u32 %s1938_s13, 3  ;;  %s270_s13 = sand.u32 1, %s1572_s25  }
  0x17   : > { %s1699_s14 = scalar_lea.vmem %s1921_s0, %s1191_s29  ;;  %s1189_s15 = sshll.u32 %s270_s13, 5 }
  0x18   : > { %v296_v7 = vld [vmem:[%s1699_s14 + $0x80] sm:$0xff]  ;;  %v297_v8 = vld [vmem:[%s1699_s14 + $0x88] sm:$0xff]  ;;  %v298_v19 = vld [vmem:[%s1699_s14 + $0x90] sm:$0xff]  ;;  %756 = vperm.xlu0 %1516, %v748_v10   ;;  %945 = vperm.xlu1 %1517, %v942_v26   ;;  %s272_s17 = scalar_lea.vmem [#allocation2], %s1189_s15  ;;  %s1112_s28 = scalar_lea.sflag [#allocation3], %s270_s13 }
  0x19   : > { %v328_v9 = vld [vmem:[%s1699_s14 + $0x180] sm:$0xff]  ;;  %v1358_v11 = vpack.c.bf16 %v297_v8, %v296_v7  ;;  %v329_v12 = vld [vmem:[%s1699_s14 + $0x188] sm:$0xff]  ;;  %v299_v21 = vld [vmem:[%s1699_s14 + $0x98] sm:$0xff]  ;;  %s1126_s18 = sshll.u32 %s272_s17, 4  ;;  %s1522_s29 = sshll.u32 %s1585_s23, 4  ;;  %s1881_s18 = int_to_ptr.vmem [resolvable:$true] %s1126_s18  ;;  %s1523_s29 = int_to_ptr.vmem [resolvable:$false] %s1522_s29 }
  0x1a   : > { %v280_v13 = vld [vmem:[%s1699_s14] sm:$0xff]  ;;  %v281_v14 = vld [vmem:[%s1699_s14 + $0x8] sm:$0xff]  ;;  %v1406_v15 = vpack.c.bf16 %v329_v12, %v328_v9  ;;  %v330_v22 = vld [vmem:[%s1699_s14 + $0x190] sm:$0xff]  ;;  %v1364_v24 = vpack.c.bf16 %v299_v21, %v298_v19  ;;  %s1518_s22 = scalar_lea.vmem %s1881_s18, 512  ;;  %s1524_s8 = scalar_lea.vmem %s1523_s29, 1024 }
  0x1b   : > { %v1361_v16 = vpack.c.bf16 %v281_v14, %v280_v13  ;;  %v312_v17 = vld [vmem:[%s1699_s14 + $0x100] sm:$0xff]  ;;  %v313_v18 = vld [vmem:[%s1699_s14 + $0x108] sm:$0xff]  ;;  %1360 = vmatprep.subr.msk.bf16.mxu0 %vm1703_vm1, %v1358_v11  ;;  %v331_v23 = vld [vmem:[%s1699_s14 + $0x198] sm:$0xff]  ;;  %p1519_p11 = scmp.ne.s32.totalorder %s1881_s18, %s1518_s22  ;;  %p1525_p0 = scmp.lt.s32.totalorder %s1881_s18, %s1523_s29 }
  0x1c   : > { %v1409_v20 = vpack.c.bf16 %v313_v18, %v312_v17  ;;  %1408 = vmatprep.subr.msk.bf16.mxu1 %vm1703_vm1, %v1406_v15  ;;  %v1412_v25 = vpack.c.bf16 %v331_v23, %v330_v22  ;;  %v282_v27 = vld [vmem:[%s1699_s14 + $0x10] sm:$0xff]  ;;  %v283_v28 = vld [vmem:[%s1699_s14 + $0x18] sm:$0xff]  ;;  %v300_v31 = vld [vmem:[%s1699_s14 + $0xa0] sm:$0xff]  ;;  %p1526_p1 = scmp.lt.s32.totalorder %s1524_s8, %s1518_s22 }
  0x1d   : > { %1363 = vmatpush3.bf16.xpose.msk.msra.mxu0 %vm1703_vm1, %v1361_v16  ;;  %v314_v29 = vld [vmem:[%s1699_s14 + $0x110] sm:$0xff]  ;;  %v315_v30 = vld [vmem:[%s1699_s14 + $0x118] sm:$0xff]  ;;  %v301_v32 = vld [vmem:[%s1699_s14 + $0xa8] sm:$0xff]  ;;  %v1367_v35 = vpack.c.bf16 %v283_v28, %v282_v27  ;;  %p1520_p12 = pnand %p1519_p11, %p1664_p5 }
  0x1e   : > { %1411 = vmatpush3.bf16.xpose.msk.msra.mxu1 %vm1703_vm1, %v1409_v20  ;;  %1366 = vmatprep.subr.msk.bf16.mxu0 %vm1703_vm1, %v1364_v24  ;;  %v332_v33 = vld [vmem:[%s1699_s14 + $0x1a0] sm:$0xff]  ;;  %v333_v34 = vld [vmem:[%s1699_s14 + $0x1a8] sm:$0xff]  ;;  %v1415_v36 = vpack.c.bf16 %v315_v30, %v314_v29  ;;  %v1370_v37 = vpack.c.bf16 %v301_v32, %v300_v31  ;;  %v302_v43 = vld [vmem:[%s1699_s14 + $0xb0] sm:$0xff]  ;;  %p1527_p2 = por %p1526_p1, %p1525_p0 }
  0x1f   : > { %1414 = vmatprep.subr.msk.bf16.mxu1 %vm1703_vm1, %v1412_v25  ;;  %v1418_v38 = vpack.c.bf16 %v333_v34, %v332_v33  ;;  %v284_v39 = vld [vmem:[%s1699_s14 + $0x20] sm:$0xff]  ;;  %v285_v40 = vld [vmem:[%s1699_s14 + $0x28] sm:$0xff]  ;;  %v303_v44 = vld [vmem:[%s1699_s14 + $0xb8] sm:$0xff]  ;;  %p1521_p13 = pneg %p1520_p12 }
  0x20   : > { %v316_v41 = vld [vmem:[%s1699_s14 + $0x120] sm:$0xff]  ;;  %v317_v42 = vld [vmem:[%s1699_s14 + $0x128] sm:$0xff]  ;;  %v334_v45 = vld [vmem:[%s1699_s14 + $0x1b0] sm:$0xff]  ;;  %v1373_v47 = vpack.c.bf16 %v285_v40, %v284_v39  ;;  %v1376_v49 = vpack.c.bf16 %v303_v44, %v302_v43 }
  0x21   : > { %v335_v46 = vld [vmem:[%s1699_s14 + $0x1b8] sm:$0xff]  ;;  %v1421_v48 = vpack.c.bf16 %v317_v42, %v316_v41  ;;  %v286_v51 = vld [vmem:[%s1699_s14 + $0x30] sm:$0xff]  ;;  %v304_v55 = vld [vmem:[%s1699_s14 + $0xc0] sm:$0xff]  ;;  %p1528_p3 = pnand %p1527_p2, %p1521_p13 }
  0x22   : > { %v1424_v50 = vpack.c.bf16 %v335_v46, %v334_v45  ;;  %v287_v52 = vld [vmem:[%s1699_s14 + $0x38] sm:$0xff]  ;;  %v318_v53 = vld [vmem:[%s1699_s14 + $0x130] sm:$0xff]  ;;  %v305_v56 = vld [vmem:[%s1699_s14 + $0xc8] sm:$0xff] }
  0x23   : > { %v319_v54 = vld [vmem:[%s1699_s14 + $0x138] sm:$0xff]  ;;  %v336_v57 = vld [vmem:[%s1699_s14 + $0x1c0] sm:$0xff]  ;;  %v337_v58 = vld [vmem:[%s1699_s14 + $0x1c8] sm:$0xff]  ;;  %v1379_v59 = vpack.c.bf16 %v287_v52, %v286_v51  ;;  %v1382_v61 = vpack.c.bf16 %v305_v56, %v304_v55 }
  0x24   : > { %v1427_v60 = vpack.c.bf16 %v319_v54, %v318_v53  ;;  %v1430_v62 = vpack.c.bf16 %v337_v58, %v336_v57  ;;  %v288_v63 = vld [vmem:[%s1699_s14 + $0x40] sm:$0xff]  ;;  %v289_v1 = vld [vmem:[%s1699_s14 + $0x48] sm:$0xff]  ;;  %v306_v4 = vld [vmem:[%s1699_s14 + $0xd0] sm:$0xff] }
  0x25   : > { %1369 = vmatpush3.bf16.xpose.msk.msra.mxu0 %vm1703_vm1, %v1367_v35  ;;  %v320_v2 = vld [vmem:[%s1699_s14 + $0x140] sm:$0xff]  ;;  %v321_v3 = vld [vmem:[%s1699_s14 + $0x148] sm:$0xff]  ;;  %v307_v5 = vld [vmem:[%s1699_s14 + $0xd8] sm:$0xff]  ;;  %v1385_v9 = vpack.c.bf16 %v289_v1, %v288_v63 }
  0x26   : > { %1417 = vmatpush3.bf16.xpose.msk.msra.mxu1 %vm1703_vm1, %v1415_v36  ;;  %1372 = vmatprep.subr.msk.bf16.mxu0 %vm1703_vm1, %v1370_v37  ;;  %v338_v7 = vld [vmem:[%s1699_s14 + $0x1d0] sm:$0xff]  ;;  %v339_v8 = vld [vmem:[%s1699_s14 + $0x1d8] sm:$0xff]  ;;  %v1433_v10 = vpack.c.bf16 %v321_v3, %v320_v2  ;;  %v1388_v11 = vpack.c.bf16 %v307_v5, %v306_v4  ;;  %v308_v17 = vld [vmem:[%s1699_s14 + $0xe0] sm:$0xff] }
  0x27   : > { %1420 = vmatprep.subr.msk.bf16.mxu1 %vm1703_vm1, %v1418_v38  ;;  %v1436_v12 = vpack.c.bf16 %v339_v8, %v338_v7  ;;  %v290_v13 = vld [vmem:[%s1699_s14 + $0x50] sm:$0xff]  ;;  %v291_v14 = vld [vmem:[%s1699_s14 + $0x58] sm:$0xff]  ;;  %v309_v18 = vld [vmem:[%s1699_s14 + $0xe8] sm:$0xff] }
  0x28   : > { %v322_v15 = vld [vmem:[%s1699_s14 + $0x150] sm:$0xff]  ;;  %v323_v16 = vld [vmem:[%s1699_s14 + $0x158] sm:$0xff]  ;;  %v340_v19 = vld [vmem:[%s1699_s14 + $0x1e0] sm:$0xff]  ;;  %v1391_v21 = vpack.c.bf16 %v291_v14, %v290_v13  ;;  %v1394_v23 = vpack.c.bf16 %v309_v18, %v308_v17 }
  0x29   : > { %v341_v20 = vld [vmem:[%s1699_s14 + $0x1e8] sm:$0xff]  ;;  %v1439_v22 = vpack.c.bf16 %v323_v16, %v322_v15  ;;  %v292_v25 = vld [vmem:[%s1699_s14 + $0x60] sm:$0xff]  ;;  %v310_v29 = vld [vmem:[%s1699_s14 + $0xf0] sm:$0xff] }
  0x2a   : > { %v1442_v24 = vpack.c.bf16 %v341_v20, %v340_v19  ;;  %v293_v26 = vld [vmem:[%s1699_s14 + $0x68] sm:$0xff]  ;;  %v324_v27 = vld [vmem:[%s1699_s14 + $0x160] sm:$0xff]  ;;  %v311_v30 = vld [vmem:[%s1699_s14 + $0xf8] sm:$0xff] }
  0x2b   : > { %v325_v28 = vld [vmem:[%s1699_s14 + $0x168] sm:$0xff]  ;;  %v342_v31 = vld [vmem:[%s1699_s14 + $0x1f0] sm:$0xff]  ;;  %v343_v32 = vld [vmem:[%s1699_s14 + $0x1f8] sm:$0xff]  ;;  %v1397_v33 = vpack.c.bf16 %v293_v26, %v292_v25  ;;  %v1400_v35 = vpack.c.bf16 %v311_v30, %v310_v29 }
  0x2c   : > { %v1445_v34 = vpack.c.bf16 %v325_v28, %v324_v27  ;;  %v1448_v36 = vpack.c.bf16 %v343_v32, %v342_v31  ;;  %v294_v37 = vld [vmem:[%s1699_s14 + $0x70] sm:$0xff]  ;;  %v295_v38 = vld [vmem:[%s1699_s14 + $0x78] sm:$0xff]  ;;  %v345_v43 = vld [vmem:[%s1922_s1 + $0x8] sm:$0xff] }
  0x2d   : > { %1375 = vmatpush3.bf16.xpose.msk.msra.mxu0 %vm1703_vm1, %v1373_v47  ;;  %v326_v39 = vld [vmem:[%s1699_s14 + $0x170] sm:$0xff]  ;;  %v327_v40 = vld [vmem:[%s1699_s14 + $0x178] sm:$0xff]  ;;  %v1403_v41 = vpack.c.bf16 %v295_v38, %v294_v37  ;;  %v746_v26 = vld [vmem:[%s1923_s2 + $0x8] sm:$0xf] }
  0x2e   : > { %1423 = vmatpush3.bf16.xpose.msk.msra.mxu1 %vm1703_vm1, %v1421_v48  ;;  %1378 = vmatprep.subr.msk.bf16.mxu0 %vm1703_vm1, %v1376_v49  ;;  %v1451_v42 = vpack.c.bf16 %v327_v40, %v326_v39  ;;  %v346_v44 = vld [vmem:[%s1922_s1 + $0x10] sm:$0x3] }
  0x2f   : > { %1426 = vmatprep.subr.msk.bf16.mxu1 %vm1703_vm1, %v1424_v50 }
  0x35   : > { %1381 = vmatpush3.bf16.xpose.msk.msra.mxu0 %vm1703_vm1, %v1379_v59 }
  0x36   : > { %1429 = vmatpush3.bf16.xpose.msk.msra.mxu1 %vm1703_vm1, %v1427_v60  ;;  %1384 = vmatprep.subr.msk.bf16.mxu0 %vm1703_vm1, %v1382_v61 }
  0x37   : > { %1432 = vmatprep.subr.msk.bf16.mxu1 %vm1703_vm1, %v1430_v62 }
  0x3d   : > { %1387 = vmatpush3.bf16.xpose.msk.msra.mxu0 %vm1703_vm1, %v1385_v9 }
  0x3e   : > { %1435 = vmatpush3.bf16.xpose.msk.msra.mxu1 %vm1703_vm1, %v1433_v10  ;;  %1390 = vmatprep.subr.msk.bf16.mxu0 %vm1703_vm1, %v1388_v11 }
  0x3f   : > { %1438 = vmatprep.subr.msk.bf16.mxu1 %vm1703_vm1, %v1436_v12 }
  0x45   : > { %1393 = vmatpush3.bf16.xpose.msk.msra.mxu0 %vm1703_vm1, %v1391_v21 }
  0x46   : > { %1441 = vmatpush3.bf16.xpose.msk.msra.mxu1 %vm1703_vm1, %v1439_v22  ;;  %1396 = vmatprep.subr.msk.bf16.mxu0 %vm1703_vm1, %v1394_v23 }
  0x47   : > { %1444 = vmatprep.subr.msk.bf16.mxu1 %vm1703_vm1, %v1442_v24  ;;  %v745_v24 = vld [vmem:[%s1923_s2] sm:$0xff] }
  0x4d   : > { %1399 = vmatpush3.bf16.xpose.msk.msra.mxu0 %vm1703_vm1, %v1397_v33 }
  0x4e   : > { %1447 = vmatpush3.bf16.xpose.msk.msra.mxu1 %vm1703_vm1, %v1445_v34  ;;  %1402 = vmatprep.subr.msk.bf16.mxu0 %vm1703_vm1, %v1400_v35 }
  0x4f   : > { %1450 = vmatprep.subr.msk.bf16.mxu1 %vm1703_vm1, %v1448_v36 }
  0x55   : > { %1405 = vmatpush3.bf16.xpose.msk.msra.mxu0 %vm1703_vm1, %v1403_v41 }
  0x56   : > { %1453 = vmatpush3.bf16.xpose.msk.msra.mxu1 %vm1703_vm1, %v1451_v42 }
  0x5c   : > { %1315 = vmatmul.mubr.msk.f32.vlgmr.msra.gmra.mrb[0].mxu0 %vm365_vm0, %v1678_v0 }
  0x5d   : > { %1353 = vmatmul.mubr.msk.f32.vlgmr.msra.gmra.mrb[0].mxu1 %vm365_vm0, %v1678_v0  ;;  %1316 = vmatprep.mubr.msk.f32.mxu0 %vm365_vm0, %v345_v43  ;;  %v1583_v0 = vmov 0.0  }
  0x5e   : > { %1354 = vmatprep.mubr.msk.f32.mxu1 %vm365_vm0, %v345_v43 }
  0x60   : > { %1317 = vmatmul.mubr.msk.f32.gmra.mrb[2].mxu0 %vm365_vm0, %v345_v43 }
  0x61   : > { %1355 = vmatmul.mubr.msk.f32.gmra.mrb[2].mxu1 %vm365_vm0, %v345_v43  ;;  %1318 = vmatprep.mubr.msk.f32.mxu0 %vm365_vm0, %v346_v44 }
  0x62   : > { %1356 = vmatprep.mubr.msk.f32.mxu1 %vm365_vm0, %v346_v44 }
  0x64   : > { %1319 = vmatmul.mubr.msk.f32.gmra.mrb[4].mxu0 %vm365_vm0, %v346_v44 }
  0x65   : > { %1357 = vmatmul.mubr.msk.f32.gmra.mrb[4].mxu1 %vm365_vm0, %v346_v44  ;;  %843 = vmatprep.mubr.f32.mxu0 %v1583_v0 }
  0x66   : > { %920 = vmatprep.mubr.f32.mxu1 %v1583_v0 }
  0x8f   : > { %v353_v6 = vpop.permute.xlu0 %352  ;;  %v363_v4 = vpop.permute.xlu1 %362 }
  0x93   : > { %v358_v50 = vpop.permute.xlu0 %357  ;;  %v752_v30 = vpop.permute.xlu1 %751 }
  0x97   : > { %v757_v33 = vpop.permute.xlu0 %756 }
 0x12f   : > { %v633_v45 = vpop.f32.mrb[0].mxu0 }
 0x130   : > { %v716_v46 = vpop.f32.mrb[0].mxu1  ;;  %v635_v47 = vpop.f32.mrb[1].mxu0  ;;  %v634_v49 = vadd.f32 %v633_v45, %v353_v6 }
 0x131   : > { %v718_v48 = vpop.f32.mrb[1].mxu1  ;;  %v717_v51 = vadd.f32 %v716_v46, %v353_v6  ;;  %v636_v52 = vadd.f32 %v635_v47, %v353_v6 }
 0x132   : > { %v719_v54 = vadd.f32 %v718_v48, %v353_v6  ;;  %v733_v61 = vmax.f32 %v634_v49, 0.0 }
 0x133   : > { %v639_v53 = vpop.f32.mrb[2].mxu0  ;;  %v735_v1 = vmax.f32 %v717_v51, 0.0  ;;  %v734_v2 = vmax.f32 %v636_v52, 0.0 }
 0x134   : > { %v640_v55 = vadd.f32 %v639_v53, %v358_v50  ;;  %v722_v56 = vpop.f32.mrb[2].mxu1  ;;  %v641_v57 = vpop.f32.mrb[3].mxu0  ;;  %v736_v8 = vmax.f32 %v719_v54, 0.0 }
 0x135   : > { %v723_v58 = vadd.f32 %v722_v56, %v358_v50  ;;  %v642_v59 = vadd.f32 %v641_v57, %v358_v50  ;;  %v724_v60 = vpop.f32.mrb[3].mxu1  ;;  %v946_v56 = vpop.permute.xlu1 %945 }
 0x136   : > { %v737_v62 = vmax.f32 %v640_v55, 0.0  ;;  %v725_v63 = vadd.f32 %v724_v60, %v358_v50  ;;  %v941_v55 = vld [vmem:[%s1924_s3] sm:$0xff] }
 0x137   : > { %v739_v3 = vmax.f32 %v723_v58, 0.0  ;;  %v738_v5 = vmax.f32 %v642_v59, 0.0  ;;  %v645_v7 = vpop.f32.mrb[4].mxu0 }
 0x138   : > { %v1456_v9 = vpack.c.bf16 %v737_v62, %v733_v61  ;;  %v740_v10 = vmax.f32 %v725_v63, 0.0  ;;  %v728_v11 = vpop.f32.mrb[4].mxu1  ;;  %v647_v12 = vpop.f32.mrb[5].mxu0  ;;  %v646_v18 = vadd.f32 %v645_v7, %v363_v4 }
 0x139   : > { %v1460_v13 = vpack.c.bf16 %v739_v3, %v735_v1  ;;  %v1454_v14 = vpack.c.bf16 %v738_v5, %v734_v2  ;;  %v648_v15 = vadd.f32 %v647_v12, %v363_v4  ;;  %v730_v16 = vpop.f32.mrb[5].mxu1  ;;  %v729_v20 = vadd.f32 %v728_v11, %v363_v4 }
 0x13a   : > { %v1458_v17 = vpack.c.bf16 %v740_v10, %v736_v8  ;;  %v731_v19 = vadd.f32 %v730_v16, %v363_v4  ;;  %v741_v23 = vmax.f32 %v646_v18, 0.0 }
 0x13b   : > { %v742_v21 = vmax.f32 %v648_v15, 0.0  ;;  %1455 = vmatprep.subr.bf16.mxu0 %v1454_v14  ;;  %v743_v25 = vmax.f32 %v729_v20, 0.0 }
 0x13c   : > { %v744_v22 = vmax.f32 %v731_v19, 0.0  ;;  %1459 = vmatprep.subr.bf16.mxu1 %v1458_v17  ;;  %1457 = vmatpush1.bf16.msra.mxu0 %v1456_v9 }
 0x13d   : > { %1461 = vmatpush1.bf16.msra.mxu1 %v1460_v13  ;;  %1262 = vmatprep.subr.msk.mxu0 %vm766_vm2, %v742_v21 }
 0x13e   : > { %1266 = vmatprep.subr.msk.mxu1 %vm766_vm2, %v744_v22 }
 0x140   : > { %1263 = vmatpush1.msk.msra.mxu0 %vm766_vm2, %v741_v23 }
 0x141   : > { %1267 = vmatpush1.msk.msra.mxu1 %vm766_vm2, %v743_v25  ;;  %1264 = vmatmul.mubr.msk.f32.vlgmr.msra.gmra.mrb[6].mxu0 %vm759_vm3, %v745_v24 }
 0x142   : > { %1268 = vmatmul.mubr.msk.f32.vlgmr.msra.gmra.mrb[6].mxu1 %vm759_vm3, %v745_v24  ;;  %849 = vmatprep.mubr.f32.mxu0 %v1583_v0 }
 0x143   : > { %926 = vmatprep.mubr.f32.mxu1 %v1583_v0 }
 0x145   : > { %1265 = vmatmul.mubr.msk.f32.gmra.mrb[8].mxu0 %vm759_vm3, %v746_v26 }
 0x146   : > { %1269 = vmatmul.mubr.msk.f32.gmra.mrb[8].mxu1 %vm759_vm3, %v746_v26  ;;  %1029 = vmatprep.mubr.f32.mxu0 %v1583_v0 }
 0x147   : > { %1100 = vmatprep.mubr.f32.mxu1 %v1583_v0 }
 0x214   : > { %v845_v27 = vpop.f32.mrb[6].mxu0 }
 0x215   : > { %v922_v28 = vpop.f32.mrb[6].mxu1  ;;  %v847_v29 = vpop.f32.mrb[7].mxu0  ;;  %v846_v32 = vadd.f32 %v845_v27, %v752_v30 }
 0x216   : > { %v924_v31 = vpop.f32.mrb[7].mxu1  ;;  %v923_v34 = vadd.f32 %v922_v28, %v752_v30  ;;  %v848_v35 = vadd.f32 %v847_v29, %v752_v30 }
 0x217   : > { %v925_v37 = vadd.f32 %v924_v31, %v752_v30  ;;  %v933_v44 = vmax.f32 %v846_v32, 0.0 }
 0x218   : > { %v851_v36 = vpop.f32.mrb[8].mxu0  ;;  %v935_v45 = vmax.f32 %v923_v34, 0.0  ;;  %v934_v46 = vmax.f32 %v848_v35, 0.0 }
 0x219   : > { %v852_v38 = vadd.f32 %v851_v36, %v757_v33  ;;  %v928_v39 = vpop.f32.mrb[8].mxu1  ;;  %v853_v40 = vpop.f32.mrb[9].mxu0  ;;  %v936_v49 = vmax.f32 %v925_v37, 0.0 }
 0x21a   : > { %v929_v41 = vadd.f32 %v928_v39, %v757_v33  ;;  %v854_v42 = vadd.f32 %v853_v40, %v757_v33  ;;  %v930_v43 = vpop.f32.mrb[9].mxu1 }
 0x21b   : > { %v937_v0 = vmax.f32 %v852_v38, 0.0  ;;  %v931_v6 = vadd.f32 %v930_v43, %v757_v33 }
 0x21c   : > { %v939_v47 = vmax.f32 %v929_v41, 0.0  ;;  %v938_v48 = vmax.f32 %v854_v42, 0.0 }
 0x21d   : > { %v1465_v50 = vpack.c.bf16 %v937_v0, %v933_v44  ;;  %v940_v51 = vmax.f32 %v931_v6, 0.0 }
 0x21e   : > { %v1471_v52 = vpack.c.bf16 %v939_v47, %v935_v45  ;;  %v1462_v53 = vpack.c.bf16 %v938_v48, %v934_v46 }
 0x21f   : > { %v1468_v54 = vpack.c.bf16 %v940_v51, %v936_v49 }
 0x220   : > { %1464 = vmatprep.subr.msk.bf16.mxu0 %vm1463_vm6, %v1462_v53 }
 0x221   : > { %1470 = vmatprep.subr.msk.bf16.mxu1 %vm1463_vm6, %v1468_v54  ;;  %1467 = vmatpush1.bf16.msk.msra.mxu0 %vm1463_vm6, %v1465_v50 }
 0x222   : > { %1473 = vmatpush1.bf16.msk.msra.mxu1 %vm1463_vm6, %v1471_v52 }
 0x224   : > { %1272 = vmatmul.mubr.msk.f32.vlgmr.msra.gmra.mrb[10].mxu0 %vm948_vm7, %v941_v55 }
 0x225   : > { %1275 = vmatmul.mubr.msk.f32.vlgmr.msra.gmra.mrb[10].mxu1 %vm948_vm7, %v941_v55 }
 0x2f7   : > { %v1031_v57 = vpop.f32.mrb[10].mxu0 }
 0x2f8   : > { %v1032_v58 = vadd.f32 %v1031_v57, %v946_v56  ;;  %v1102_v59 = vpop.f32.mrb[10].mxu1  ;;  %v1033_v60 = vpop.f32.mrb[11].mxu0 }
 0x2f9   : > { %v1103_v61 = vadd.f32 %v1102_v59, %v946_v56  ;;  %v1034_v62 = vadd.f32 %v1033_v60, %v946_v56  ;;  %v1104_v63 = vpop.f32.mrb[11].mxu1 }
 0x2fa   : > { %1107 = vst [vmem:[%s272_s17] sm:$0xff] %v1032_v58  ;;  %v1105_v1 = vadd.f32 %v1104_v63, %v946_v56 }
 0x2fb   : > { %1109 = vst [vmem:[%s272_s17 + $0x10] sm:$0xff] %v1103_v61  ;;  %1108 = vst [vmem:[%s272_s17 + $0x8] sm:$0xff] %v1034_v62 }
 0x2fc   : > { %1110 = vst [vmem:[%s272_s17 + $0x18] sm:$0xff] %v1105_v1 }
 0x2fd   : > { %1531 = shalt.err (!%p1528_p3)
}
 0x2fe   : > { %s1532_s9 = scalar_lea.hbm %s1879_s21, 512  ;;  %s1536_s15 = scalar_lea.hbm %s1928_s7, 1024 }
 0x2ff   : > { %p1533_p4 = scmp.ne.s32.totalorder %s1879_s21, %s1532_s9  ;;  %p1537_p9 = scmp.lt.u32.totalorder %s1879_s21, %s1928_s7 }
 0x300   : > { %p1538_p10 = scmp.lt.u32.totalorder %s1536_s15, %s1532_s9  ;;  %p1540_p12 = scmp.lt.u32.totalorder %s1532_s9, %s1879_s21 }
 0x301   : > { %p1534_p7 = pnand %p1533_p4, %p1664_p5 }
 0x302   : > { %p1539_p11 = por %p1538_p10, %p1537_p9 }
 0x303   : > { %p1535_p8 = pneg %p1534_p7 }
 0x304   : > { %p1541_p13 = por %p1540_p12, %p1539_p11 }
 0x306   : > { %p1542_p0 = pnand %p1541_p13, %p1535_p8 }
 0x308   : > { %1545 = shalt.err (!%p1542_p0)
}
 0x309   : > { %1474 = dma.vmem_to_hbm [thread:$0]  (%p1664_p5), %s1881_s18, 512, %s1879_s21, %s1112_s28  }
 0x30a PF: > { %p1480_p1 = scmp.ge.s32.totalorder %s1580_s27, 2  ;;  %s1138_s19 = sand.u32 1, %s1568_s24  }
 0x30b   : > { %s1139_s20 = scalar_lea.sflag [#allocation3], %s1138_s19 }
 0x30c   : > { %p1477_p2 = pnand %p1480_p1, %p1668_p6 }
 0x30e   : > { %1563 = dma.done.wait (!%p1477_p2), %s1139_s20, 512  }
 0x30f   : > { %1565 = vsyncadd (!%p1477_p2), %s1139_s20, 4294966784  ;;  %p17_p3 = scmp.ge.s32.totalorder %s1651_s30, 4   ;;  %s1933_s24 = smov %s1572_s25 }
 0x310   : > { %s1934_s25 = smov %s1576_s26  ;;  %s1935_s26 = smov %s1662_s10 }
 0x311   : > { %s1936_s27 = smov %s1651_s30  ;;  %19 = sbr.rel (!%p17_p3) target bundleno = 3 (0x3), region = 83 }
 0x318   :  { %1144 = vsyncpa [#allocation3], 1 }
 0x319   :  { %1146 = vsyncpa [#allocation3 + $0x1], 1 }

// kernel: hypercube_block_pallas.1
= control target key start
LH: loop header
LB: loop body
LE: loop exit
PB: predicated region body
PF: predicated region fallthrough
CT: control target
= control target key end

     0   :  { %12 = vsyncpa [#allocation4], 0  ;;  %s1441_s0 = inlined_call_operand.vmem [shape: f32[27,1024], index: 0, kind: input, shape index: {}]   ;;  %s1442_s1 = inlined_call_operand.vmem [shape: f32[18,27], index: 1, kind: input, shape index: {}]   ;;  %s1443_s2 = inlined_call_operand.vmem [shape: f32[12,18], index: 2, kind: input, shape index: {}]   ;;  %s1444_s3 = inlined_call_operand.vmem [shape: f32[8,12], index: 3, kind: input, shape index: {}]   ;;  %s1445_s4 = inlined_call_operand.vmem [shape: f32[18,1], index: 4, kind: input, shape index: {}]   ;;  %s1446_s5 = inlined_call_operand.vmem [shape: f32[12,1], index: 5, kind: input, shape index: {}]   ;;  %s1447_s6 = inlined_call_operand.vmem [shape: f32[8,1], index: 6, kind: input, shape index: {}]   ;;  %s1448_s7 = inlined_call_operand.hbm [shape: f32[8,1024], index: 7, kind: output, shape index: {}]  }
   0x1   :  { %14 = vsyncpa [#allocation4 + $0x1], 0  ;;  %s1245_s24 = smov 0   ;;  %s1247_s25 = smov 0  }
   0x2   :  { %s1249_s26 = smov 0   ;;  %s1251_s27 = smov 0  }
   0x3 LB: > { %s1012_s28 = sadd.s32 4294967295, %s1199_s27   ;;  %s1013_s29 = sadd.s32 4294967294, %s1199_s27   ;;  %s1199_s27 = sphi %s1251_s27, %s1456_s27   ;;  %s1195_s26 = sphi %s1249_s26, %s1455_s26   ;;  %s1191_s25 = sphi %s1247_s25, %s1454_s25   ;;  %s1187_s24 = sphi %s1245_s24, %s1453_s24  }
   0x4   : > { %s1268_s30 = sadd.s32 1, %s1199_s27   ;;  %s27_s8 = sadd.s32 1, %s1195_s26 }
   0x5   : > { %s24_s9 = ssub.s32 %s1199_s27, %s1268_s30  ;;  %p34_p0 = scmp.ne.s32.totalorder %s1195_s26, %s1191_s25 }
   0x6   : > { %p25_p1 = scmp.eq.s32.totalorder %s24_s9, 0  ;;  %p35_p2 = scmp.eq.s32.totalorder %s1199_s27, 0 }
   0x7   : > { %p190_p3 = scmp.eq.s32.totalorder %s1012_s28, 1  ;;  %p195_p4 = scmp.ne.s32.totalorder %s1191_s25, %s1187_s24 }
   0x8   : > { %s1281_s10 = scalar_select %p25_p1, %s1195_s26, %s27_s8  }
   0x9   : > { %p36_p5 = por %p35_p2, %p34_p0  ;;  %p1283_p6 = por %p190_p3, %p34_p0 }
   0xa   : > { %p196_p7 = scmp.eq.s32.totalorder %s1013_s29, 1  ;;  %p1015_p9 = scmp.ge.s32.totalorder %s1199_s27, 2 }
   0xc   : > { %p1287_p8 = por %p196_p7, %p195_p4  ;;  %230 = sbr.rel (%p1015_p9) target bundleno = 31 (0x1f), region = 40 }
  0x13   : > { %233 = sbr.rel (!%p36_p5) target bundleno = 31 (0x1f), region = 44  ;;  %s235_s13 = sand.u32 (%p36_p5), 1, %s1195_s26  }
  0x14   : > { %s1051_s14 = sshll.u32 (%p36_p5), %s1199_s27, 5  ;;  %s1016_s15 = sshll.u32 (%p36_p5), %s235_s13, 7 }
  0x15   : > { %s1299_s18 = scalar_lea.vmem (%p36_p5), %s1441_s0, %s1051_s14  ;;  %s237_s19 = scalar_lea.vmem (%p36_p5), [#allocation2], %s1016_s15 }
  0x16   : > { %v253_v0 = vld [vmem:[%s1299_s18] sm:$0xff] (%p36_p5)  ;;  %v255_v1 = vld [vmem:[%s1299_s18 + $0x8] sm:$0xff] (%p36_p5)  ;;  %v257_v2 = vld [vmem:[%s1299_s18 + $0x10] sm:$0xff] (%p36_p5) }
  0x17   : > { %254 = vst [vmem:[%s237_s19] sm:$0xff] (%p36_p5), %v253_v0  ;;  %256 = vst [vmem:[%s237_s19 + $0x8] sm:$0xff] (%p36_p5), %v255_v1  ;;  %v259_v3 = vld [vmem:[%s1299_s18 + $0x18] sm:$0xff] (%p36_p5)  ;;  %v261_v4 = vld [vmem:[%s1299_s18 + $0x40] sm:$0xff] (%p36_p5) }
  0x18   : > { %258 = vst [vmem:[%s237_s19 + $0x10] sm:$0xff] (%p36_p5), %v257_v2  ;;  %v263_v5 = vld [vmem:[%s1299_s18 + $0x48] sm:$0xff] (%p36_p5)  ;;  %260 = vst [vmem:[%s237_s19 + $0x18] sm:$0xff] (%p36_p5), %v259_v3  ;;  %v265_v6 = vld [vmem:[%s1299_s18 + $0x50] sm:$0xff] (%p36_p5) }
  0x19   : > { %262 = vst [vmem:[%s237_s19 + $0x20] sm:$0xff] (%p36_p5), %v261_v4  ;;  %264 = vst [vmem:[%s237_s19 + $0x28] sm:$0xff] (%p36_p5), %v263_v5  ;;  %v267_v7 = vld [vmem:[%s1299_s18 + $0x58] sm:$0xff] (%p36_p5)  ;;  %v269_v8 = vld [vmem:[%s1299_s18 + $0x80] sm:$0xff] (%p36_p5) }
  0x1a   : > { %266 = vst [vmem:[%s237_s19 + $0x30] sm:$0xff] %v265_v6  ;;  %268 = vst [vmem:[%s237_s19 + $0x38] sm:$0xff] %v267_v7  ;;  %v271_v9 = vld [vmem:[%s1299_s18 + $0x88] sm:$0xff]  ;;  %v273_v10 = vld [vmem:[%s1299_s18 + $0x90] sm:$0xff] }
  0x1b   : > { %270 = vst [vmem:[%s237_s19 + $0x40] sm:$0xff] %v269_v8  ;;  %v275_v11 = vld [vmem:[%s1299_s18 + $0x98] sm:$0xff]  ;;  %272 = vst [vmem:[%s237_s19 + $0x48] sm:$0xff] %v271_v9  ;;  %v277_v12 = vld [vmem:[%s1299_s18 + $0xc0] sm:$0xff] }
  0x1c   : > { %274 = vst [vmem:[%s237_s19 + $0x50] sm:$0xff] %v273_v10  ;;  %276 = vst [vmem:[%s237_s19 + $0x58] sm:$0xff] %v275_v11  ;;  %v279_v13 = vld [vmem:[%s1299_s18 + $0xc8] sm:$0xff]  ;;  %v281_v14 = vld [vmem:[%s1299_s18 + $0xd0] sm:$0xff] }
  0x1d   : > { %278 = vst [vmem:[%s237_s19 + $0x60] sm:$0xff] %v277_v12  ;;  %280 = vst [vmem:[%s237_s19 + $0x68] sm:$0xff] %v279_v13  ;;  %v283_v15 = vld [vmem:[%s1299_s18 + $0xd8] sm:$0xff] }
  0x1e   : > { %282 = vst [vmem:[%s237_s19 + $0x70] sm:$0xff] %v281_v14  ;;  %284 = vst [vmem:[%s237_s19 + $0x78] sm:$0xff] %v283_v15 }
  0x1f PF: > { %p1019_p10 = scmp.ge.s32.totalorder %s1199_s27, 1  ;;  %p289_p11 = scmp.lt.s32.totalorder %s1199_s27, 3 }
  0x21   : > { %p290_p12 = pnand %p1019_p10, %p289_p11 }
  0x22   : > { %s1320_s20 = sand.u32 (!%p290_p12), 1, %s1191_s25   ;;  %vm376_vm0 = vcmask (!%p290_p12), 1042432   ;;  %v1201_v16 = vmov (!%p290_p12), 0.0   ;;  %vm1202_vm1 = vmmov (!%p290_p12), 1   ;;  %v1203_v18 = vmov (!%p290_p12), 0   ;;  %v348_v19 = vld [vmem:[%s1445_s4] sm:$0xff] (!%p290_p12) }
  0x23   : > { %293 = sbr.rel (%p290_p12) target bundleno = 735 (0x2df), region = 67  ;;  %s1020_s21 = sshll.u32 (!%p290_p12), %s1320_s20, 7  ;;  %453 = vmatprep.mubr.f32.mxu0 (!%p290_p12), %v1201_v16  ;;  %536 = vmatprep.mubr.f32.mxu1 (!%p290_p12), %v1201_v16  ;;  %vm1326_vm2 = vmpackc.low (!%p290_p12), %vm376_vm0, %vm1202_vm1  ;;  %v349_v23 = vld [vmem:[%s1445_s4 + $0x8] sm:$0xff] (!%p290_p12)  ;;  %v350_v44 = vld [vmem:[%s1445_s4 + $0x10] sm:$0x3] (!%p290_p12)  ;;  %vm366_vm3 = vcmask (!%p290_p12), 220160  }
  0x24   : > { %1135 = vset.pattern.permute.xlu0 (!%p290_p12), %v1203_v18  ;;  %1136 = vset.pattern.permute.xlu1 (!%p290_p12), %v1203_v18  ;;  %s298_s29 = scalar_lea.vmem (!%p290_p12), [#allocation2], %s1020_s21  ;;  %v570_v46 = vld [vmem:[%s1446_s5 + $0x8] sm:$0xf] (!%p290_p12)  ;;  %v345_v47 = vld [vmem:[%s1442_s1] sm:$0xff] (!%p290_p12)  ;;  %v347_v51 = vld [vmem:[%s1442_s1 + $0x10] sm:$0x3] (!%p290_p12) }
  0x25   : > { %v330_v20 = vld [vmem:[%s298_s29 + $0x8] sm:$0xff] (!%p290_p12)  ;;  %v332_v22 = vld [vmem:[%s298_s29 + $0x18] sm:$0xff] (!%p290_p12)  ;;  %353 = vperm.xlu0 (!%p290_p12), %1135, %v348_v19   ;;  %v329_v26 = vld [vmem:[%s298_s29] sm:$0xff] (!%p290_p12)  ;;  %363 = vperm.xlu1 (!%p290_p12), %1136, %v350_v44   ;;  %vm588_vm4 = vcmask (!%p290_p12), 1041408   ;;  %vm581_vm5 = vcmask (!%p290_p12), 146432   ;;  %vm774_vm6 = vcmask (!%p290_p12), 1043456  }
  0x26   : > { %v334_v21 = vld [vmem:[%s298_s29 + $0x28] sm:$0xff] (!%p290_p12)  ;;  %v336_v25 = vld [vmem:[%s298_s29 + $0x38] sm:$0xff] (!%p290_p12)  ;;  %v333_v27 = vld [vmem:[%s298_s29 + $0x20] sm:$0xff] (!%p290_p12)  ;;  %vm770_vm8 = vcmask (!%p290_p12), 97280   ;;  %s1021_s21 = sshll.u32 (!%p290_p12), %s1320_s20, 5  ;;  %s1052_s22 = sshll.u32 (!%p290_p12), %s1012_s28, 9 }
  0x27   : > { %v1053_v24 = vpack.c.bf16 (!%p290_p12), %v334_v21, %v330_v20  ;;  %v1063_v28 = vpack.c.bf16 (!%p290_p12), %v336_v25, %v332_v22  ;;  %v1055_v29 = vpack.c.bf16 (!%p290_p12), %v333_v27, %v329_v26  ;;  %v331_v30 = vld [vmem:[%s298_s29 + $0x10] sm:$0xff] (!%p290_p12)  ;;  %v338_v32 = vld [vmem:[%s298_s29 + $0x48] sm:$0xff] (!%p290_p12)  ;;  %v340_v35 = vld [vmem:[%s298_s29 + $0x58] sm:$0xff] (!%p290_p12)  ;;  %s326_s23 = scalar_lea.vmem (!%p290_p12), [#allocation3], %s1021_s21  ;;  %s1397_s13 = scalar_lea.hbm (!%p290_p12), %s1448_s7, %s1052_s22 }
  0x28   : > { %v335_v31 = vld [vmem:[%s298_s29 + $0x30] sm:$0xff] (!%p290_p12)  ;;  %v342_v34 = vld [vmem:[%s298_s29 + $0x68] sm:$0x7] (!%p290_p12)  ;;  %v344_v36 = vld [vmem:[%s298_s29 + $0x78] sm:$0x7] (!%p290_p12)  ;;  %s934_s28 = scalar_lea.sflag (!%p290_p12), [#allocation4], %s1320_s20 }
  0x29   : > { %1054 = vmatprep.subr.bf16.mxu0 (!%p290_p12), %v1053_v24  ;;  %v1065_v33 = vpack.c.bf16 (!%p290_p12), %v335_v31, %v331_v30  ;;  %1064 = vmatprep.subr.bf16.mxu1 (!%p290_p12), %v1063_v28  ;;  %v1057_v37 = vpack.c.bf16 (!%p290_p12), %v342_v34, %v338_v32  ;;  %v1067_v38 = vpack.c.bf16 (!%p290_p12), %v344_v36, %v340_v35  ;;  %v337_v39 = vld [vmem:[%s298_s29 + $0x40] sm:$0xff] (!%p290_p12)  ;;  %v339_v41 = vld [vmem:[%s298_s29 + $0x50] sm:$0xff] (!%p290_p12)  ;;  %v346_v49 = vld [vmem:[%s1442_s1 + $0x8] sm:$0xff] (!%p290_p12)  ;;  %s1204_s15 = smov (!%p290_p12), [#allocation3]  }
  0x2a   : > { %1056 = vmatpush1.bf16.msra.mxu0 %v1055_v29  ;;  %v341_v40 = vld [vmem:[%s298_s29 + $0x60] sm:$0x7]  ;;  %v343_v43 = vld [vmem:[%s298_s29 + $0x70] sm:$0x7]  ;;  %358 = vperm.xlu0 %1135, %v349_v23   ;;  %vm1082_vm7 = vmpackc.low %vm774_vm6, %vm1202_vm1  ;;  %s948_s29 = sshll.u32 %s326_s23, 4  ;;  %s1141_s16 = sshll.u32 %s1204_s15, 4  ;;  %s1399_s29 = int_to_ptr.vmem [resolvable:$true] %s948_s29  ;;  %s1142_s16 = int_to_ptr.vmem [resolvable:$false] %s1141_s16 }
  0x2b   : > { %1066 = vmatpush1.bf16.msra.mxu1 %v1065_v33  ;;  %v1060_v42 = vpack.c.bf16 %v341_v40, %v337_v39  ;;  %1059 = vmatprep.subr.msk.bf16.mxu0 %vm1326_vm2, %v1057_v37  ;;  %v1070_v45 = vpack.c.bf16 %v343_v43, %v339_v41  ;;  %v569_v48 = vld [vmem:[%s1446_s5] sm:$0xff]  ;;  %v568_v33 = vld [vmem:[%s1443_s2 + $0x8] sm:$0xf]  ;;  %s1137_s14 = scalar_lea.vmem %s1399_s29, 512  ;;  %s1143_s17 = scalar_lea.vmem %s1142_s16, 1024 }
  0x2c   : > { %1069 = vmatprep.subr.msk.bf16.mxu1 %vm1326_vm2, %v1067_v38  ;;  %573 = vperm.xlu1 %1136, %v569_v48   ;;  %v764_v50 = vld [vmem:[%s1447_s6] sm:$0xff]  ;;  %p1138_p13 = scmp.ne.s32.totalorder %s1399_s29, %s1137_s14  ;;  %p1144_p2 = scmp.lt.s32.totalorder %s1399_s29, %s1142_s16 }
  0x2d   : > { %v567_v31 = vld [vmem:[%s1443_s2] sm:$0xff]  ;;  %p1145_p3 = scmp.lt.s32.totalorder %s1143_s17, %s1137_s14 }
  0x2e   : > { %1062 = vmatpush1.bf16.msk.msra.mxu0 %vm1326_vm2, %v1060_v42  ;;  %578 = vperm.xlu0 %1135, %v570_v46   ;;  %p1139_p0 = pnand %p1138_p13, %p1283_p6 }
  0x2f   : > { %1072 = vmatpush1.bf16.msk.msra.mxu1 %vm1326_vm2, %v1070_v45  ;;  %p1146_p4 = por %p1145_p3, %p1144_p2 }
  0x30   : > { %767 = vperm.xlu1 %1136, %v764_v50   ;;  %p1140_p1 = pneg %p1139_p0 }
  0x31   : > { %1024 = vmatmul.mubr.msk.f32.vlgmr.msra.gmra.mrb[0].mxu0 %vm366_vm3, %v345_v47 }
  0x32   : > { %1029 = vmatmul.mubr.msk.f32.vlgmr.msra.gmra.mrb[0].mxu1 %vm366_vm3, %v345_v47  ;;  %459 = vmatprep.mubr.f32.mxu0 %v1201_v16  ;;  %p1147_p5 = pnand %p1146_p4, %p1140_p1 }
  0x33   : > { %542 = vmatprep.mubr.f32.mxu1 %v1201_v16 }
  0x35   : > { %1025 = vmatmul.mubr.msk.f32.gmra.mrb[2].mxu0 %vm366_vm3, %v346_v49 }
  0x36   : > { %1030 = vmatmul.mubr.msk.f32.gmra.mrb[2].mxu1 %vm366_vm3, %v346_v49  ;;  %465 = vmatprep.mubr.f32.mxu0 %v1201_v16 }
  0x37   : > { %548 = vmatprep.mubr.f32.mxu1 %v1201_v16 }
  0x39   : > { %1026 = vmatmul.mubr.msk.f32.gmra.mrb[4].mxu0 %vm366_vm3, %v347_v51 }
  0x3a   : > { %1031 = vmatmul.mubr.msk.f32.gmra.mrb[4].mxu1 %vm366_vm3, %v347_v51  ;;  %665 = vmatprep.mubr.f32.mxu0 %v1201_v16 }
  0x3b   : > { %742 = vmatprep.mubr.f32.mxu1 %v1201_v16 }
  0xa4   : > { %v354_v52 = vpop.permute.xlu0 %353  ;;  %v364_v11 = vpop.permute.xlu1 %363 }
  0xa9   : > { %v359_v58 = vpop.permute.xlu0 %358 }
  0xab   : > { %v574_v37 = vpop.permute.xlu1 %573 }
  0xad   : > { %v579_v40 = vpop.permute.xlu0 %578 }
 0x104   : > { %v455_v53 = vpop.f32.mrb[0].mxu0 }
 0x105   : > { %v538_v54 = vpop.f32.mrb[0].mxu1  ;;  %v457_v55 = vpop.f32.mrb[1].mxu0  ;;  %v456_v57 = vadd.f32 %v455_v53, %v354_v52 }
 0x106   : > { %v540_v56 = vpop.f32.mrb[1].mxu1  ;;  %v539_v59 = vadd.f32 %v538_v54, %v354_v52  ;;  %v458_v60 = vadd.f32 %v457_v55, %v354_v52 }
 0x107   : > { %v541_v62 = vadd.f32 %v540_v56, %v354_v52  ;;  %v555_v5 = vmax.f32 %v456_v57, 0.0 }
 0x108   : > { %v461_v61 = vpop.f32.mrb[2].mxu0  ;;  %v557_v8 = vmax.f32 %v539_v59, 0.0  ;;  %v556_v9 = vmax.f32 %v458_v60, 0.0 }
 0x109   : > { %v462_v63 = vadd.f32 %v461_v61, %v359_v58  ;;  %v544_v0 = vpop.f32.mrb[2].mxu1  ;;  %v463_v1 = vpop.f32.mrb[3].mxu0  ;;  %v558_v14 = vmax.f32 %v541_v62, 0.0 }
 0x10a   : > { %v545_v2 = vadd.f32 %v544_v0, %v359_v58  ;;  %v464_v3 = vadd.f32 %v463_v1, %v359_v58  ;;  %v546_v4 = vpop.f32.mrb[3].mxu1  ;;  %v768_v0 = vpop.permute.xlu1 %767 }
 0x10b   : > { %v559_v6 = vmax.f32 %v462_v63, 0.0  ;;  %v547_v7 = vadd.f32 %v546_v4, %v359_v58  ;;  %v763_v63 = vld [vmem:[%s1444_s3] sm:$0xff] }
 0x10c   : > { %v561_v10 = vmax.f32 %v545_v2, 0.0  ;;  %v560_v12 = vmax.f32 %v464_v3, 0.0  ;;  %v467_v13 = vpop.f32.mrb[4].mxu0 }
 0x10d   : > { %v1075_v15 = vpack.c.bf16 %v559_v6, %v555_v5  ;;  %v562_v17 = vmax.f32 %v547_v7, 0.0  ;;  %v550_v18 = vpop.f32.mrb[4].mxu1  ;;  %v469_v19 = vpop.f32.mrb[5].mxu0  ;;  %v468_v25 = vadd.f32 %v467_v13, %v364_v11 }
 0x10e   : > { %v1079_v20 = vpack.c.bf16 %v561_v10, %v557_v8  ;;  %v1073_v21 = vpack.c.bf16 %v560_v12, %v556_v9  ;;  %v470_v22 = vadd.f32 %v469_v19, %v364_v11  ;;  %v552_v23 = vpop.f32.mrb[5].mxu1  ;;  %v551_v27 = vadd.f32 %v550_v18, %v364_v11 }
 0x10f   : > { %v1077_v24 = vpack.c.bf16 %v562_v17, %v558_v14  ;;  %v553_v26 = vadd.f32 %v552_v23, %v364_v11  ;;  %v563_v30 = vmax.f32 %v468_v25, 0.0 }
 0x110   : > { %v564_v28 = vmax.f32 %v470_v22, 0.0  ;;  %1074 = vmatprep.subr.bf16.mxu0 %v1073_v21  ;;  %v565_v32 = vmax.f32 %v551_v27, 0.0 }
 0x111   : > { %v566_v29 = vmax.f32 %v553_v26, 0.0  ;;  %1078 = vmatprep.subr.bf16.mxu1 %v1077_v24  ;;  %1076 = vmatpush1.bf16.msra.mxu0 %v1075_v15 }
 0x112   : > { %1080 = vmatpush1.bf16.msra.mxu1 %v1079_v20  ;;  %1032 = vmatprep.subr.msk.mxu0 %vm588_vm4, %v564_v28 }
 0x113   : > { %1036 = vmatprep.subr.msk.mxu1 %vm588_vm4, %v566_v29 }
 0x115   : > { %1033 = vmatpush1.msk.msra.mxu0 %vm588_vm4, %v563_v30 }
 0x116   : > { %1037 = vmatpush1.msk.msra.mxu1 %vm588_vm4, %v565_v32  ;;  %1034 = vmatmul.mubr.msk.f32.vlgmr.msra.gmra.mrb[6].mxu0 %vm581_vm5, %v567_v31 }
 0x117   : > { %1038 = vmatmul.mubr.msk.f32.vlgmr.msra.gmra.mrb[6].mxu1 %vm581_vm5, %v567_v31  ;;  %671 = vmatprep.mubr.f32.mxu0 %v1201_v16 }
 0x118   : > { %748 = vmatprep.mubr.f32.mxu1 %v1201_v16 }
 0x11a   : > { %1035 = vmatmul.mubr.msk.f32.gmra.mrb[8].mxu0 %vm581_vm5, %v568_v33 }
 0x11b   : > { %1039 = vmatmul.mubr.msk.f32.gmra.mrb[8].mxu1 %vm581_vm5, %v568_v33  ;;  %851 = vmatprep.mubr.f32.mxu0 %v1201_v16 }
 0x11c   : > { %922 = vmatprep.mubr.f32.mxu1 %v1201_v16 }
 0x1e9   : > { %v667_v34 = vpop.f32.mrb[6].mxu0 }
 0x1ea   : > { %v744_v35 = vpop.f32.mrb[6].mxu1  ;;  %v669_v36 = vpop.f32.mrb[7].mxu0  ;;  %v668_v39 = vadd.f32 %v667_v34, %v574_v37 }
 0x1eb   : > { %v746_v38 = vpop.f32.mrb[7].mxu1  ;;  %v745_v41 = vadd.f32 %v744_v35, %v574_v37  ;;  %v670_v42 = vadd.f32 %v669_v36, %v574_v37 }
 0x1ec   : > { %v747_v44 = vadd.f32 %v746_v38, %v574_v37  ;;  %v755_v51 = vmax.f32 %v668_v39, 0.0 }
 0x1ed   : > { %v673_v43 = vpop.f32.mrb[8].mxu0  ;;  %v757_v53 = vmax.f32 %v745_v41, 0.0  ;;  %v756_v54 = vmax.f32 %v670_v42, 0.0 }
 0x1ee   : > { %v674_v45 = vadd.f32 %v673_v43, %v579_v40  ;;  %v750_v46 = vpop.f32.mrb[8].mxu1  ;;  %v675_v47 = vpop.f32.mrb[9].mxu0  ;;  %v758_v57 = vmax.f32 %v747_v44, 0.0 }
 0x1ef   : > { %v751_v48 = vadd.f32 %v750_v46, %v579_v40  ;;  %v676_v49 = vadd.f32 %v675_v47, %v579_v40  ;;  %v752_v50 = vpop.f32.mrb[9].mxu1 }
 0x1f0   : > { %v759_v16 = vmax.f32 %v674_v45, 0.0  ;;  %v753_v52 = vadd.f32 %v752_v50, %v579_v40 }
 0x1f1   : > { %v761_v55 = vmax.f32 %v751_v48, 0.0  ;;  %v760_v56 = vmax.f32 %v676_v49, 0.0 }
 0x1f2   : > { %v1084_v58 = vpack.c.bf16 %v759_v16, %v755_v51  ;;  %v762_v59 = vmax.f32 %v753_v52, 0.0 }
 0x1f3   : > { %v1090_v60 = vpack.c.bf16 %v761_v55, %v757_v53  ;;  %v1081_v61 = vpack.c.bf16 %v760_v56, %v756_v54 }
 0x1f4   : > { %v1087_v62 = vpack.c.bf16 %v762_v59, %v758_v57 }
 0x1f5   : > { %1083 = vmatprep.subr.msk.bf16.mxu0 %vm1082_vm7, %v1081_v61 }
 0x1f6   : > { %1089 = vmatprep.subr.msk.bf16.mxu1 %vm1082_vm7, %v1087_v62  ;;  %1086 = vmatpush1.bf16.msk.msra.mxu0 %vm1082_vm7, %v1084_v58 }
 0x1f7   : > { %1092 = vmatpush1.bf16.msk.msra.mxu1 %vm1082_vm7, %v1090_v60 }
 0x1f9   : > { %1042 = vmatmul.mubr.msk.f32.vlgmr.msra.gmra.mrb[10].mxu0 %vm770_vm8, %v763_v63 }
 0x1fa   : > { %1045 = vmatmul.mubr.msk.f32.vlgmr.msra.gmra.mrb[10].mxu1 %vm770_vm8, %v763_v63 }
 0x2cc   : > { %v853_v1 = vpop.f32.mrb[10].mxu0 }
 0x2cd   : > { %v854_v2 = vadd.f32 %v853_v1, %v768_v0  ;;  %v924_v3 = vpop.f32.mrb[10].mxu1  ;;  %v855_v4 = vpop.f32.mrb[11].mxu0 }
 0x2ce   : > { %v925_v5 = vadd.f32 %v924_v3, %v768_v0  ;;  %v856_v6 = vadd.f32 %v855_v4, %v768_v0  ;;  %v926_v7 = vpop.f32.mrb[11].mxu1 }
 0x2cf   : > { %929 = vst [vmem:[%s326_s23] sm:$0xff] %v854_v2  ;;  %v927_v8 = vadd.f32 %v926_v7, %v768_v0 }
 0x2d0   : > { %931 = vst [vmem:[%s326_s23 + $0x10] sm:$0xff] %v925_v5  ;;  %930 = vst [vmem:[%s326_s23 + $0x8] sm:$0xff] %v856_v6 }
 0x2d1   : > { %932 = vst [vmem:[%s326_s23 + $0x18] sm:$0xff] %v927_v8 }
 0x2d2   : > { %1150 = shalt.err (!%p1147_p5)
}
 0x2d3   : > { %s1151_s20 = scalar_lea.hbm %s1397_s13, 512  ;;  %s1155_s21 = scalar_lea.hbm %s1448_s7, 1024 }
 0x2d4   : > { %p1152_p7 = scmp.ne.s32.totalorder %s1397_s13, %s1151_s20  ;;  %p1156_p12 = scmp.lt.u32.totalorder %s1397_s13, %s1448_s7 }
 0x2d5   : > { %p1157_p13 = scmp.lt.u32.totalorder %s1155_s21, %s1151_s20  ;;  %p1159_p1 = scmp.lt.u32.totalorder %s1151_s20, %s1397_s13 }
 0x2d6   : > { %p1153_p10 = pnand %p1152_p7, %p1283_p6 }
 0x2d7   : > { %p1158_p0 = por %p1157_p13, %p1156_p12 }
 0x2d8   : > { %p1154_p11 = pneg %p1153_p10 }
 0x2d9   : > { %p1160_p2 = por %p1159_p1, %p1158_p0 }
 0x2db   : > { %p1161_p3 = pnand %p1160_p2, %p1154_p11 }
 0x2dd   : > { %1164 = shalt.err (!%p1161_p3)
}
 0x2de   : > { %1093 = dma.vmem_to_hbm [thread:$0]  (%p1283_p6), %s1399_s29, 512, %s1397_s13, %s934_s28  }
 0x2df PF: > { %s960_s8 = sand.u32 1, %s1187_s24   ;;  %p1096_p4 = pnand %p1015_p9, %p1287_p8 }
 0x2e0   : > { %s961_s9 = scalar_lea.sflag [#allocation4], %s960_s8 }
 0x2e1   : > { %1182 = dma.done.wait (!%p1096_p4), %s961_s9, 512  }
 0x2e2   : > { %1184 = vsyncadd (!%p1096_p4), %s961_s9, 4294966784  ;;  %p17_p5 = scmp.ge.s32.totalorder %s1268_s30, 4   ;;  %s1453_s24 = smov %s1191_s25 }
 0x2e3   : > { %s1454_s25 = smov %s1195_s26  ;;  %s1455_s26 = smov %s1281_s10 }
 0x2e4   : > { %s1456_s27 = smov %s1268_s30  ;;  %19 = sbr.rel (!%p17_p5) target bundleno = 3 (0x3), region = 111 }
 0x2eb   :  { %966 = vsyncpa [#allocation4], 1 }
 0x2ec   :  { %968 = vsyncpa [#allocation4 + $0x1], 1 }

</bundles_post_ra>
